<compile_context>
chip_gen: v6e
topology: v6e:2x2x1
jax: 0.10.0
libtpu: 0.0.40
codegen_flags: <defaults>
</compile_context>

<pallas_src>
import numpy as np
import jax
import jax.numpy as jnp
from jax.experimental import pallas as pl
from jax.experimental.pallas import tpu as pltpu

_TWO_PI = np.float32(2.0 * np.pi)   # == 2 * float32(pi): power-of-two scaling is exact


def _round_up(n, m):
    return ((n + m - 1) // m) * m


def _min_sublane(dtype):
    # Minimum second-to-last tile dim for this dtype: 8 (f32), 16 (bf16), 32 (int8/fp8).
    return max(8, 32 // jnp.dtype(dtype).itemsize)


def _gfp_kernel_select(x_ref, w2_ref, o_ref):
    """Path for H % 128 != 0. w2_ref = [W | W] of shape (1, 2H)."""
    proj = (x_ref[...] * w2_ref[...]) * _TWO_PI            # (TB, 2H), VPU broadcast
    h = proj.shape[-1] // 2
    lane = jax.lax.broadcasted_iota(jnp.int32, proj.shape, 1)
    out = jnp.where(lane < h, jnp.sin(proj), jnp.cos(proj))
    o_ref[...] = out.astype(o_ref.dtype)                    # single lane-dense unmasked store


def _gfp_kernel_split(x_ref, w_ref, o_ref):
    """Path for H % 128 == 0. w_ref = W of shape (1, H)."""
    proj = (x_ref[...] * w_ref[...]) * _TWO_PI              # (TB, H)
    h = proj.shape[-1]
    o_ref[:, :h] = jnp.sin(proj).astype(o_ref.dtype)        # lane-aligned unmasked stores
    o_ref[:, h:] = jnp.cos(proj).astype(o_ref.dtype)


def init_gfp_weights(key, embed_dim, scale=30.0, dtype=jnp.float32):
    """Module __init__: W = randn(embed_dim//2) * scale (non-trainable buffer)."""
    return jax.random.normal(key, (embed_dim // 2,), dtype=dtype) * scale


def _choose_tile(batch, out_dim, out_dtype, block_b):
    sub = _min_sublane(out_dtype)
    if block_b is None:
        # ~1 MiB output tile per grid step (per-step overhead ~0.35us becomes
        # negligible); capped at 4096 rows.  Keeps double-buffered tiles plus
        # f32 temporaries far under every generation's scoped-VMEM default.
        target = (1 << 20) // max(1, out_dim * jnp.dtype(out_dtype).itemsize)
        block_b = min(max(target, sub), 4096)
    block_b = max(_round_up(block_b, sub), sub)
    bp_min = _round_up(batch, sub)
    if bp_min <= block_b:
        return bp_min, bp_min                               # single grid step
    # Prefer a tile that divides the sublane-rounded batch: no pad, and no
    # post-kernel slice copy (extra HBM traffic).  Fall back to pad + slice.
    t = block_b
    while t >= max(sub, block_b // 2):
        if bp_min % t == 0:
            return t, bp_min
        t -= sub
    return block_b, _round_up(bp_min, block_b)


def gaussian_fourier_projection(x, W, *, block_b=None, out_dtype=jnp.float32,
                                min_pallas_elems=1 << 16):
    """x: (B,), W: (H,)  ->  (B, 2H) = [sin(2*pi*x*W) | cos(2*pi*x*W)]."""
    B = x.shape[0]
    H = W.shape[0]
    out_dim = 2 * H

    # Tiny problems: launch + DMA setup dominates; let XLA fuse into the consumer MLP.
    if B * out_dim < min_pallas_elems:
        xp = (x[:, None].astype(jnp.float32) * W[None, :].astype(jnp.float32)) * _TWO_PI
        return jnp.concatenate([jnp.sin(xp), jnp.cos(xp)], axis=-1).astype(out_dtype)

    TB, Bp = _choose_tile(B, out_dim, out_dtype, block_b)

    x2 = x.reshape(B, 1).astype(jnp.float32)
    if Bp != B:
        x2 = jnp.pad(x2, ((0, Bp - B), (0, 0)))

    if H % 128 == 0:
        kernel = _gfp_kernel_split
        w_in = W.reshape(1, H).astype(jnp.float32)
    else:
        kernel = _gfp_kernel_select
        w_in = jnp.concatenate([W, W]).reshape(1, out_dim).astype(jnp.float32)
    w_cols = w_in.shape[1]

    out_itemsize = jnp.dtype(out_dtype).itemsize
    out_tile_bytes = TB * out_dim * out_itemsize
    # double-buffered out tiles + lane-padded x tiles + resident W + f32 temporaries
    vmem_need = (2 * out_tile_bytes + 2 * TB * 128 * 4
                 + 8 * _round_up(w_cols, 128) * 4 + 6 * TB * out_dim * 4)
    vmem_limit = int(min(max(vmem_need, 8 << 20), 32 << 20))

    out = pl.pallas_call(
        kernel,
        out_shape=jax.ShapeDtypeStruct((Bp, out_dim), out_dtype),
        grid_spec=pl.GridSpec(
            grid=(Bp // TB,),
            in_specs=[
                pl.BlockSpec((TB, 1), lambda i: (i, 0)),       # batch tile of x
                pl.BlockSpec((1, w_cols), lambda i: (0, 0)),   # W stays VMEM-resident
            ],
            out_specs=pl.BlockSpec((TB, out_dim), lambda i: (i, 0)),
        ),
        compiler_params=pltpu.CompilerParams(
            # TODO(synk): on v7x, verify via xprof that the batch axis really
            # shards across both TensorCores; if not, switch to pltpu.CORE_PARALLEL.
            dimension_semantics=("parallel",),
            vmem_limit_bytes=vmem_limit,
        ),
        cost_estimate=pl.CostEstimate(
            flops=2 * Bp * out_dim,
            transcendentals=Bp * out_dim,
            bytes_accessed=Bp * 4 + w_cols * 4 + Bp * out_dim * out_itemsize,
        ),
    )(x2, w_in)

    return out[:B] if Bp != B else out


def _reference(x, W):
    # Literal module math: x[:, None] * W[None, :] * 2 * pi, then [sin | cos].
    x_proj = x[:, None] * W[None, :] * 2.0 * np.pi
    return jnp.concatenate([jnp.sin(x_proj), jnp.cos(x_proj)], axis=-1)


def _check(key, embed_dim, batch, scale=30.0, block_b=None):
    k_x, k_w = jax.random.split(key)
    W = init_gfp_weights(k_w, embed_dim, scale)
    x = jax.random.uniform(k_x, (batch,), dtype=jnp.float32)
    out = gaussian_fourier_projection(x, W, block_b=block_b, min_pallas_elems=0)
    out = jax.block_until_ready(out)
    ref = _reference(x, W)
    assert out.shape == (batch, 2 * (embed_dim // 2)), out.shape
    np.testing.assert_allclose(np.asarray(out), np.asarray(ref), rtol=1e-5, atol=2e-5)


if __name__ == "__main__":
    key = jax.random.PRNGKey(0)
    k0, k1, k2 = jax.random.split(key, 3)
    # embed_dim=128 (H=64): lane-dense duplicated-weight kernel, single tile.
    _check(k0, embed_dim=128, batch=8)
    # embed_dim=256 (H=128): split-store kernel, multi-step grid, no pad / no slice.
    _check(k1, embed_dim=256, batch=24, block_b=16)
    # batch not a sublane multiple: pad + tail-slice path.
    _check(k2, embed_dim=128, batch=10)
    print("KERNEL_OK")
</pallas_src>

<mosaic_0001>
module attributes {stable_mosaic.version = 11 : i64} {
  func.func @_gfp_kernel_select(%arg0: i32, %arg1: memref<8x1xf32, #tpu.memory_space<vmem>>, %arg2: memref<1x128xf32, #tpu.memory_space<vmem>>, %arg3: memref<8x128xf32, #tpu.memory_space<vmem>>) attributes {dimension_semantics = [#tpu.dimension_semantics<parallel>], iteration_bounds = array<i64: 1>, scalar_prefetch = 0 : i64, scratch_operands = 0 : i64, tpu.core_type = #tpu.core_type<tc>, window_params = [{transform_indices = @transform_0, window_bounds = array<i64: 8, 1>}, {pipeline_mode = #tpu.pipeline_mode<synchronous>, transform_indices = @transform_1, window_bounds = array<i64: 1, 128>}, {transform_indices = @transform_2, window_bounds = array<i64: 8, 128>}]} {
    %c0 = arith.constant 0 : index
    %c0_0 = arith.constant 0 : index
    %0 = vector.load %arg1[%c0, %c0_0] : memref<8x1xf32, #tpu.memory_space<vmem>>, vector<8x1xf32>
    %c0_1 = arith.constant 0 : index
    %c0_2 = arith.constant 0 : index
    %1 = vector.load %arg2[%c0_1, %c0_2] : memref<1x128xf32, #tpu.memory_space<vmem>>, vector<1x128xf32>
    %2 = vector.broadcast %0 : vector<8x1xf32> to vector<8x128xf32>
    %3 = vector.broadcast %1 : vector<1x128xf32> to vector<8x128xf32>
    %4 = arith.mulf %2, %3 : vector<8x128xf32>
    %cst = arith.constant 6.28318548 : f32
    %5 = vector.broadcast %cst : f32 to vector<8x128xf32>
    %6 = arith.mulf %4, %5 : vector<8x128xf32>
    %7 = tpu.iota {dimensions = array<i32: 1>} : vector<8x128xi32>
    %c64_i32 = arith.constant 64 : i32
    %8 = vector.broadcast %c64_i32 : i32 to vector<8x128xi32>
    %9 = arith.cmpi slt, %7, %8 : vector<8x128xi32>
    %10 = math.sin %6 : vector<8x128xf32>
    %11 = math.cos %6 : vector<8x128xf32>
    %12 = arith.select %9, %10, %11 : vector<8x128xi1>, vector<8x128xf32>
    %c0_3 = arith.constant 0 : index
    %c0_4 = arith.constant 0 : index
    %13 = vector.load %arg3[%c0_3, %c0_4] : memref<8x128xf32, #tpu.memory_space<vmem>>, vector<8x128xf32>
    tpu.vector_store %arg3[%c0_3, %c0_4], %12 {strides = array<i32>} : memref<8x128xf32, #tpu.memory_space<vmem>>, vector<8x128xf32>,
    return
  }
  func.func @transform_0(%arg0: i32) -> (i32, i32) {
    %c0_i32 = arith.constant 0 : i32
    %c0_i32_0 = arith.constant 0 : i32
    return %arg0, %c0_i32 : i32, i32
  }
  func.func @transform_1(%arg0: i32) -> (i32, i32) {
    %c0_i32 = arith.constant 0 : i32
    %c0_i32_0 = arith.constant 0 : i32
    %c0_i32_1 = arith.constant 0 : i32
    return %c0_i32, %c0_i32_0 : i32, i32
  }
  func.func @transform_2(%arg0: i32) -> (i32, i32) {
    %c0_i32 = arith.constant 0 : i32
    %c0_i32_0 = arith.constant 0 : i32
    return %arg0, %c0_i32 : i32, i32
  }
}

</mosaic_0001>

<bundles_post_ra>
// kernel: tpu_custom_call.1
= control target key start
LH: loop header
LB: loop body
LE: loop exit
PB: predicated region body
PF: predicated region fallthrough
CT: control target
= control target key end

     0   :  { %v301_v1 = vmov 0   ;;  %s355_s0 = inlined_call_operand.vmem [shape: f32[8,1], index: 0, kind: input, shape index: {}]   ;;  %s356_s1 = inlined_call_operand.vmem [shape: f32[1,128], index: 1, kind: input, shape index: {}]   ;;  %s357_s2 = inlined_call_operand.hbm [shape: f32[8,128], index: 2, kind: output, shape index: {}]  }
   0x1   :  { %v12_v0 = vld [vmem:[%s355_s0] sm:$0xff]  ;;  %274 = vset.pattern.permute.xlu0 %v301_v1 }
   0x2   :  { %16 = vperm.xlu0 %274, %v12_v0  }
   0x3   :  { %7 = vsyncpa [#allocation3], 0  ;;  %v253_v2 = vld [vmem:[%s356_s1] ss:$0 sm:$0xff]  ;;  %v302_v16 = vmov 683565275  }
   0x4   :  { %v303_v18 = vmov 2475754826   ;;  %v304_v21 = vmov 2131351028   ;;  %v305_v24 = vmov 2102212464  }
   0x5   :  { %v306_v27 = vmov 920167782   ;;  %v307_v30 = vmov 1326507024   ;;  %s308_s0 = smov [#allocation2]  }
   0x6   :  { %s245_s1 = sshll.u32 %s308_s0, 4  ;;  %s246_s1 = int_to_ptr.vmem [resolvable:$true] %s245_s1 }
   0x7   :  { %s279_s13 = scalar_lea.vmem %s246_s1, 128  ;;  %p284_p1 = scmp.lt.s32.totalorder %s246_s1, %s246_s1 }
   0x8   :  { %p280_p0 = scmp.ne.s32.totalorder %s246_s1, %s279_s13  ;;  %p285_p2 = scmp.lt.s32.totalorder %s279_s13, %s279_s13 }
   0xa   :  { %p286_p3 = por %p285_p2, %p284_p1 }
   0xc   :  { %p287_p4 = pnand %p286_p3, %p280_p0 }
  0x7d   :  { %v17_v3 = vpop.permute.xlu0 %16 }
  0x7e   :  { %v25_v4 = vmul.f32 %v253_v2, %v17_v3 }
  0x80   :  { %v330_v5 = vmul.f32 6.2831855, %v25_v4 }
  0x82   :  { %v33_v6 = vand.u32 2139095040, %v330_v5  ;;  %v30_v10 = vand.u32 2147483647, %v330_v5  ;;  %vm32_vm7 = vcmp.lt.s32.totalorder %v330_v5, 0 }
  0x84   :  { %v34_v7 = vshrl.u32 %v33_v6, 23  ;;  %v37_v13 = vand.u32 8388607, %v30_v10  ;;  %vm31_vm8 = vcmp.le.f32.partialorder %v30_v10, 0.7853982 }
  0x86   :  { %v254_v8 = vadd.s32 4294967169, %v34_v7  ;;  %v38_v32 = vor.u32 8388608, %v37_v13 }
  0x88   :  { %v40_v9 = vadd.s32 1, %v254_v8  ;;  %v78_v46 = vshll.u32 %v38_v32, 8 }
  0x8a   :  { %vm41_vm0 = vcmp.gt.s32.totalorder %v40_v9, 0 }
  0x8b   :  { %v42_v11 = vsel %vm41_vm0, %v40_v9, 0  ;;  %vm122_vm0 = vweird.f32 %v330_v5 }
  0x8c   :  { %v44_v12 = vand.u32 31, %v42_v11  ;;  %v43_v15 = vshrl.u32 %v42_v11, 5 }
  0x8e   :  { %v45_v14 = vsub.s32 32, %v44_v12  ;;  %v47_v17 = vshll.u32 %v302_v16, %v44_v12  ;;  %v50_v19 = vshll.u32 %v303_v18, %v44_v12  ;;  %v53_v23 = vshll.u32 %v304_v21, %v44_v12 }
  0x8f   :  { %v56_v26 = vshll.u32 %v305_v24, %v44_v12  ;;  %v59_v29 = vshll.u32 %v306_v27, %v44_v12  ;;  %vm62_vm1 = vcmp.lt.s32.totalorder %v43_v15, 1  ;;  %vm65_vm2 = vcmp.lt.s32.totalorder %v43_v15, 4 }
  0x90   :  { %v48_v20 = vshrl.u32 %v303_v18, %v45_v14  ;;  %v51_v22 = vshrl.u32 %v304_v21, %v45_v14  ;;  %v54_v25 = vshrl.u32 %v305_v24, %v45_v14  ;;  %v57_v28 = vshrl.u32 %v306_v27, %v45_v14 }
  0x91   :  { %v60_v31 = vshrl.u32 %v307_v30, %v45_v14  ;;  %v46_v41 = vshrl.u32 %v302_v16, %v45_v14  ;;  %vm64_vm3 = vcmp.lt.s32.totalorder %v43_v15, 3  ;;  %vm63_vm4 = vcmp.lt.s32.totalorder %v43_v15, 2 }
  0x92   :  { %v49_v33 = vor.u32 %v48_v20, %v47_v17  ;;  %v52_v34 = vor.u32 %v51_v22, %v50_v19  ;;  %v55_v35 = vor.u32 %v54_v25, %v53_v23  ;;  %v58_v36 = vor.u32 %v57_v28, %v56_v26 }
  0x93   :  { %v61_v37 = vor.u32 %v60_v31, %v59_v29  ;;  %v27_v25 = vlaneseq }
  0x94   :  { %v67_v38 = vsel %vm65_vm2, %v55_v35, 2102212464  ;;  %v70_v39 = vsel %vm62_vm1, %v49_v33, %v52_v34  ;;  %v74_v40 = vsel %vm62_vm1, %v52_v34, %v55_v35  ;;  %v71_v42 = vsel %vm65_vm2, %v58_v36, 920167782 }
  0x95   :  { %v75_v43 = vsel %vm65_vm2, %v61_v37, 1326507024  ;;  %v72_v44 = vsel %vm64_vm3, %v55_v35, %v71_v42  ;;  %v66_v47 = vsel %vm62_vm1, %v46_v41, %v49_v33  ;;  %v68_v48 = vsel %vm64_vm3, %v52_v34, %v67_v38 }
  0x96   :  { %v76_v45 = vsel %vm64_vm3, %v58_v36, %v75_v43  ;;  %v73_v49 = vsel %vm63_vm4, %v70_v39, %v72_v44  ;;  %v69_v55 = vsel %vm63_vm4, %v66_v47, %v68_v48  ;;  %v28_v27 = vand.u32 127, %v27_v25 }
  0x97   :  { %v77_v50 = vsel %vm63_vm4, %v74_v40, %v76_v45  ;;  %v339_v53 = vmul.u32.u64.low %v78_v46, %v73_v49  ;;  %v340_v54 = vmul.u32.u64.high %v78_v46, %v73_v49, %v339_v53  ;;  %v85_v57 = vmul.u32 %v78_v46, %v69_v55 }
  0x98   :  { %v336_v51 = vmul.u32.u64.low %v78_v46, %v77_v50  ;;  %v337_v52 = vmul.u32.u64.high %v78_v46, %v77_v50, %v336_v51  ;;  %vm29_vm9 = vcmp.lt.s32.totalorder %v28_v27, 64 }
  0x99   :  { %v88_v56 = vadd.s32 1, %v340_v54 }
  0x9a   :  { %vm87_vm5 = vc.u32 %v337_v52, %v339_v53  ;;  %v86_v6 = vadd.s32 %v339_v53, %v337_v52 }
  0x9b   :  { %v89_v58 = vsel %vm87_vm5, %v88_v56, %v340_v54 }
  0x9c   :  { %v90_v59 = vadd.s32 %v89_v58, %v85_v57 }
  0x9e   :  { %v91_v60 = vadd.s32 536870912, %v90_v59 }
  0xa0   :  { %v92_v61 = vshrl.u32 %v91_v60, 30 }
  0xa2   :  { %v93_v62 = vshll.u32 %v92_v61, 30  ;;  %v116_v20 = vsub.s32 4, %v92_v61 }
  0xa4   :  { %v94_v63 = vsub.s32 %v90_v59, %v93_v62  ;;  %v117_v23 = vsel %vm32_vm7, %v116_v20, %v92_v61 }
  0xa5   :  { %v119_v24 = vsel %vm31_vm8, 0, %v117_v23 }
  0xa6   :  { %v96_v0 = vsub.s32 0, %v94_v63  ;;  %v123_v26 = vadd.s32 3, %v119_v24  ;;  %v227_v29 = vand.u32 3, %v119_v24 }
  0xa8   :  { %v255_v1 = vmin.u32 %v96_v0, %v94_v63  ;;  %v124_v28 = vand.u32 3, %v123_v26  ;;  %vm232_vm11 = vcmp.eq.s32.totalorder %v227_v29, 2  ;;  %vm229_vm13 = vcmp.eq.s32.totalorder %v227_v29, 0 }
  0xa9   :  { %vm228_vm15 = vcmp.lt.s32.totalorder %v227_v29, 2 }
  0xaa   :  { %v98_v2 = vclz %v255_v1  ;;  %vm129_vm10 = vcmp.eq.s32.totalorder %v124_v28, 2  ;;  %vm126_vm12 = vcmp.eq.s32.totalorder %v124_v28, 0  ;;  %vm125_vm14 = vcmp.lt.s32.totalorder %v124_v28, 2 }
  0xac   :  { %v256_v3 = vadd.s32 4294967294, %v98_v2 }
  0xae   :  { %vm257_vm6 = vcmp.lt.s32.totalorder %v256_v3, 0 }
  0xaf   :  { %v101_v4 = vsel %vm257_vm6, 0, %v256_v3 }
  0xb0   :  { %v102_v7 = vsub.s32 32, %v101_v4  ;;  %v106_v8 = vsub.s32 4294967266, %v101_v4  ;;  %v103_v9 = vshll.u32 %v94_v63, %v101_v4 }
  0xb2   :  { %v104_v11 = vshrl.u32 %v86_v6, %v102_v7  ;;  %v107_v12 = vadd.s32 127, %v106_v8 }
  0xb4   :  { %v105_v13 = vor.u32 %v104_v11, %v103_v9  ;;  %v108_v14 = vshll.u32 %v107_v12, 23 }
  0xb6   :  { %v109_v15 = vor.u32 4788187, %v108_v14  ;;  %v112_v17 = vcvt.s32.f32 %v105_v13 }
  0xb8   :  { %v110_v16 = vand.u32 2147483647, %v109_v15 }
  0xba   :  { %v113_v18 = vmul.f32 %v112_v17, %v110_v16 }
  0xbc   :  { %v114_v19 = vxor.u32 2147483648, %v113_v18 }
  0xbe   :  { %v115_v21 = vsel %vm32_vm7, %v114_v19, %v113_v18 }
  0xbf   :  { %v118_v22 = vsel %vm31_vm8, %v330_v5, %v115_v21 }
  0xc0   :  { %275 = vcosq.f32 %v118_v22 }
  0xc1   :  { %277 = vsinq.f32 %v118_v22 }
  0xcd   :  { %v276_v30 = vpop.eup %275 }
  0xce   :  { %v278_v31 = vpop.eup %277  ;;  %v130_v32 = vxor.u32 2147483648, %v276_v30 }
  0xcf   :  { %v127_v33 = vxor.u32 2147483648, %v278_v31 }
  0xd0   :  { %v131_v10 = vsel %vm129_vm10, %v130_v32, %v278_v31  ;;  %v234_v34 = vsel %vm232_vm11, %v130_v32, %v278_v31 }
  0xd1   :  { %v128_v35 = vsel %vm126_vm12, %v276_v30, %v127_v33  ;;  %v231_v36 = vsel %vm229_vm13, %v276_v30, %v127_v33 }
  0xd2   :  { %v132_v37 = vsel %vm125_vm14, %v128_v35, %v131_v10  ;;  %v235_v38 = vsel %vm228_vm15, %v231_v36, %v234_v34 }
  0xd3   :  { %v133_v39 = vsel %vm122_vm0, nan, %v132_v37  ;;  %v236_v40 = vsel %vm122_vm0, nan, %v235_v38 }
  0xd4   :  { %v237_v41 = vsel %vm29_vm9, %v133_v39, %v236_v40 }
  0xd5   :  { %238 = vst [vmem:[#allocation2] sm:$0xff] %v237_v41 }
  0xd6   :  { %290 = shalt.err (!%p287_p4)
}
  0xd7   :  { %248 = dma.vmem_to_hbm [thread:$0]  %s246_s1, 128, %s357_s2, [#allocation3]  }
  0xd8   :  { %299 = dma.done.wait [#allocation3], 128  }
  0xd9   :  { %300 = vsyncadd [#allocation3], 4294967168 }
  0xda   :  { %252 = vsyncpa [#allocation3], 1 }

</bundles_post_ra>
